<compile_context>
chip_gen: v6e
topology: v6e:2x2x1
jax: 0.10.0
libtpu: 0.0.40
codegen_flags: <defaults>
</compile_context>

<pallas_src>
import jax
import jax.numpy as jnp
from jax.experimental import pallas as pl
from jax.experimental.pallas import tpu as pltpu

LANES = 128                     # vreg lane width (last dim)
SUBLANES = 8                    # vreg sublane count (f32)
GRANULE = SUBLANES * LANES      # 1024 elements = one f32 vreg
PALLAS_MIN_ELEMENTS = 262144    # below this, fused plain JAX is strictly faster


def _round_up(x: int, m: int) -> int:
    return ((x + m - 1) // m) * m


def dxdt_kernel(w_ref, t_ref, o_ref):
    # w_ref: (1,) f32 in SMEM; t_ref/o_ref: (tile_rows, 128) f32 in VMEM.
    # y = t * W[0, 0]   (exactly nn.Linear(1, 1, bias=False))
    o_ref[...] = t_ref[...] * w_ref[0]


def _pallas_scale(t_flat, w_flat, tile_rows):
    """Lane-dense, row-tiled elementwise scale: out_flat[i] = t_flat[i] * w."""
    n = t_flat.shape[0]

    # Pad only up to one vreg granule; ragged last grid block is masked by
    # Pallas, so no over-padding to a multiple of tile_rows*128.
    padded_n = _round_up(n, GRANULE)
    padded_rows = padded_n // LANES            # multiple of 8

    # Tile sizing: multiple of 8, never larger than the slab.
    tile_rows = max(SUBLANES, (tile_rows // SUBLANES) * SUBLANES)
    tile_rows = min(tile_rows, padded_rows)
    # v7x megacore: keep >= 2 grid steps so the "parallel" axis can shard
    # across both TensorCores (no-op on single-TC v5e/v6e).
    if padded_rows >= 2 * SUBLANES and tile_rows > padded_rows // 2:
        tile_rows = _round_up(padded_rows // 2, SUBLANES)

    grid = (pl.cdiv(padded_rows, tile_rows),)

    t2d = jnp.pad(t_flat, (0, padded_n - n)).reshape(padded_rows, LANES)

    out2d = pl.pallas_call(
        dxdt_kernel,
        out_shape=jax.ShapeDtypeStruct((padded_rows, LANES), jnp.float32),
        grid=grid,
        in_specs=[
            # scalar weight lives in SMEM, untiled (no padded VMEM tile)
            pl.BlockSpec(memory_space=pltpu.MemorySpace.SMEM),
            pl.BlockSpec((tile_rows, LANES), lambda i: (i, 0)),
        ],
        out_specs=pl.BlockSpec((tile_rows, LANES), lambda i: (i, 0)),
        compiler_params=pltpu.CompilerParams(
            dimension_semantics=("parallel",),
        ),
        cost_estimate=pl.CostEstimate(
            flops=padded_n,
            transcendentals=0,
            bytes_accessed=8 * padded_n,   # read + write f32 per element
        ),
    )(w_flat, t2d)

    return out2d.reshape(padded_n)[:n]


def dxdt_forward(t, weight, x=None, *, tile_rows=4096, force_pallas=False):
    """JAX/Pallas equivalent of dXdt.forward(t, x). `x` is ignored (as in torch)."""
    t = jnp.asarray(t, dtype=jnp.float32)
    if t.ndim == 0:
        # matches: torch.reshape(t, [1]) / np.array([t], dtype=np.float32)
        t = jnp.reshape(t, (1,))
    weight = jnp.asarray(weight, dtype=jnp.float32)
    out_shape = t.shape   # in_features == out_features == 1 -> shape preserved

    n = int(t.size)
    if n < PALLAS_MIN_ELEMENTS and not force_pallas:
        # small-N / ODE-solver path: pallas_call fixed cost would dominate
        return (t * weight.reshape(-1)[0]).reshape(out_shape)

    out_flat = _pallas_scale(t.reshape(-1), weight.reshape(-1), tile_rows)
    return out_flat.reshape(out_shape)


if __name__ == "__main__":
    key = jax.random.PRNGKey(0)
    k_w, k_t1, k_t2, k_t3 = jax.random.split(key, 4)

    # nn.Linear(1, 1, bias=False): weight (1, 1), torch default init U(-1, 1).
    weight = jax.random.uniform(k_w, (1, 1), dtype=jnp.float32,
                                minval=-1.0, maxval=1.0)

    # Case 1: python-scalar time (the ODE-solver path) -> shape (1,) [fast path]
    t_scalar = 0.5
    y_scalar = jax.block_until_ready(dxdt_forward(t_scalar, weight, x=None))

    # Case 2: small batch of times (8, 1) -> (8, 1)  [fast path]
    t_batch = jax.random.normal(k_t1, (8, 1), dtype=jnp.float32)
    y_batch = jax.block_until_ready(dxdt_forward(t_batch, weight, x=None))

    # Case 3: batch at the Pallas cutoff (262144, 1): granule-aligned slab,
    # tile_rows capped so grid has 2 steps (megacore-friendly on v7x).
    t_big = jax.random.normal(k_t2, (262144, 1), dtype=jnp.float32)
    y_big = jax.block_until_ready(dxdt_forward(t_big, weight, x=None))

    # Case 4: small, non-granule-aligned input forced through the kernel to
    # exercise the pad + ragged-block path.
    t_odd = jax.random.normal(k_t3, (1000, 1), dtype=jnp.float32)
    y_odd = jax.block_until_ready(
        dxdt_forward(t_odd, weight, x=None, force_pallas=True))

    # Reference check (pure JAX): y = t @ W^T
    ref_scalar = jnp.reshape(jnp.float32(t_scalar), (1,)) * weight[0, 0]
    ref_batch = t_batch @ weight.T
    ref_big = t_big @ weight.T
    ref_odd = t_odd @ weight.T

    assert y_scalar.shape == (1,)
    assert y_batch.shape == (8, 1)
    assert y_big.shape == (262144, 1)
    assert y_odd.shape == (1000, 1)
    assert jnp.allclose(y_scalar, ref_scalar, atol=1e-6)
    assert jnp.allclose(y_batch, ref_batch, atol=1e-6)
    assert jnp.allclose(y_big, ref_big, atol=1e-6)
    assert jnp.allclose(y_odd, ref_odd, atol=1e-6)

    print("KERNEL_OK")
</pallas_src>

<mosaic_0001>
module attributes {stable_mosaic.version = 11 : i64} {
  func.func @dxdt_kernel(%arg0: i32, %arg1: memref<1xf32, #tpu.memory_space<smem>>, %arg2: memref<1024x128xf32, #tpu.memory_space<vmem>>, %arg3: memref<1024x128xf32, #tpu.memory_space<vmem>>) attributes {dimension_semantics = [#tpu.dimension_semantics<parallel>], iteration_bounds = array<i64: 2>, scalar_prefetch = 0 : i64, scratch_operands = 0 : i64, tpu.core_type = #tpu.core_type<tc>, window_params = [{transform_indices = @transform_0, window_bounds = array<i64: 1>}, {transform_indices = @transform_1, window_bounds = array<i64: 1024, 128>}, {transform_indices = @transform_2, window_bounds = array<i64: 1024, 128>}]} {
    %c0 = arith.constant 0 : index
    %c0_0 = arith.constant 0 : index
    %0 = vector.load %arg2[%c0, %c0_0] : memref<1024x128xf32, #tpu.memory_space<vmem>>, vector<1024x128xf32>
    %c0_1 = arith.constant 0 : index
    %1 = memref.load %arg1[%c0_1] : memref<1xf32, #tpu.memory_space<smem>>
    %2 = vector.broadcast %1 : f32 to vector<1024x128xf32>
    %3 = arith.mulf %0, %2 : vector<1024x128xf32>
    %c0_2 = arith.constant 0 : index
    %c0_3 = arith.constant 0 : index
    %4 = vector.load %arg3[%c0_2, %c0_3] : memref<1024x128xf32, #tpu.memory_space<vmem>>, vector<1024x128xf32>
    tpu.vector_store %arg3[%c0_2, %c0_3], %3 {strides = array<i32>} : memref<1024x128xf32, #tpu.memory_space<vmem>>, vector<1024x128xf32>,
    return
  }
  func.func @transform_0(%arg0: i32) -> i32 {
    %c0_i32 = arith.constant 0 : i32
    %c0_i32_0 = arith.constant 0 : i32
    return %c0_i32 : i32
  }
  func.func @transform_1(%arg0: i32) -> (i32, i32) {
    %c0_i32 = arith.constant 0 : i32
    %c0_i32_0 = arith.constant 0 : i32
    return %arg0, %c0_i32 : i32, i32
  }
  func.func @transform_2(%arg0: i32) -> (i32, i32) {
    %c0_i32 = arith.constant 0 : i32
    %c0_i32_0 = arith.constant 0 : i32
    return %arg0, %c0_i32 : i32, i32
  }
}

</mosaic_0001>

<bundles_post_ra>
// kernel: tpu_custom_call.1
= control target key start
LH: loop header
LB: loop body
LE: loop exit
PB: predicated region body
PF: predicated region fallthrough
CT: control target
= control target key end

     0   :  { %s1367_s0 = inlined_call_operand.<no memory space> [shape: f32[1], index: 0, kind: input, shape index: {}]   ;;  %s1368_s1 = inlined_call_operand.hbm [shape: f32[2048,128], index: 1, kind: input, shape index: {}]   ;;  %s1369_s2 = inlined_call_operand.hbm [shape: f32[2048,128], index: 2, kind: output, shape index: {}]  }
   0x1   :  { %7 = sst [smem:[#allocation2]] %s1367_s0 }
   0x2   :  { %8 = vsyncpa [#allocation4], 0 }
   0x3   :  { %10 = vsyncpa [#allocation4 + $0x1], 0 }
   0x4   :  { %11 = vsyncpa [#allocation5], 0 }
   0x5   :  { %13 = vsyncpa [#allocation5 + $0x1], 0  ;;  %s822_s11 = smov 0   ;;  %s824_s12 = smov 0  }
   0x6   :  { %s826_s13 = smov 0   ;;  %s828_s14 = smov 0  }
   0x7 LB: > { %s843_s0 = sadd.s32 4294967295, %s796_s14   ;;  %s638_s15 = sadd.s32 4294967294, %s796_s14   ;;  %s796_s14 = sphi %s828_s14, %s1384_s14   ;;  %s792_s13 = sphi %s826_s13, %s1383_s13   ;;  %s788_s12 = sphi %s824_s12, %s1382_s12   ;;  %s784_s11 = sphi %s822_s11, %s1381_s11  }
   0x8   : > { %s847_s16 = sadd.s32 1, %s796_s14   ;;  %s47_s17 = sadd.s32 1, %s792_s13 }
   0x9   : > { %s44_s18 = ssub.s32 %s796_s14, %s847_s16  ;;  %p54_p0 = scmp.ne.s32.totalorder %s792_s13, %s788_s12 }
   0xa   : > { %p45_p1 = scmp.eq.s32.totalorder %s44_s18, 0  ;;  %p55_p2 = scmp.eq.s32.totalorder %s796_s14, 0 }
   0xb   : > { %p60_p3 = scmp.ne.s32.totalorder %s788_s12, %s784_s11  ;;  %p61_p4 = scmp.eq.s32.totalorder %s843_s0, 0 }
   0xc   : > { %s859_s19 = scalar_select %p45_p1, %s792_s13, %s47_s17  }
   0xd   : > { %p861_p5 = por %p55_p2, %p54_p0  ;;  %p865_p6 = por %p61_p4, %p60_p3 }
   0xe   : > { %p84_p7 = scmp.eq.s32.totalorder %s843_s0, 1  ;;  %p90_p8 = scmp.eq.s32.totalorder %s638_s15, 1 }
   0xf   : > { %s1373_s21 = scalar_select %p865_p6, 1, 0 }
  0x10   : > { %p666_p10 = scmp.lt.s32.totalorder %s796_s14, 2  ;;  %p872_p11 = por %p84_p7, %p54_p0 }
  0x11   : > { %p876_p12 = por %p90_p8, %p60_p3  ;;  %s113_s24 = sand.u32 1, %s792_s13  }
  0x12   : > { %s1374_s22 = scalar_select %p872_p11, 1, 0 }
  0x13   : > { %s1375_s23 = scalar_select %p876_p12, 1, 0 }
  0x14   : > { %s652_s25 = sshll.u32 %s796_s14, 14  ;;  %s641_s26 = sshll.u32 %s113_s24, 10 }
  0x15   : > { %s885_s29 = scalar_lea.hbm %s1368_s1, %s652_s25  ;;  %s117_s30 = scalar_lea.vmem [#allocation3], %s641_s26 }
  0x16   : > { %s124_s3 = sshll.u32 %s117_s30, 4  ;;  %p889_p13 = pnand %p666_p10, %p861_p5  ;;  %s893_s3 = int_to_ptr.vmem [resolvable:$true] %s124_s3 }
  0x17   : > { %s895_s5 = scalar_lea.sflag [#allocation4], %s113_s24  ;;  %s704_s6 = scalar_lea.hbm %s885_s29, 16384 }
  0x18   : > { %p705_p0 = scmp.ne.s32.totalorder %s885_s29, %s704_s6  ;;  %p706_p1 = pneg %p889_p13 }
  0x19   : > { %s709_s9 = scalar_lea.hbm %s1368_s1, 32768  ;;  %p710_p4 = scmp.lt.s32.totalorder %s885_s29, %s1368_s1 }
  0x1a   : > { %p707_p2 = pnand %p706_p1, %p705_p0  ;;  %p711_p5 = scmp.lt.s32.totalorder %s709_s9, %s704_s6 }
  0x1c   : > { %p708_p3 = pneg %p707_p2  ;;  %p712_p7 = por %p711_p5, %p710_p4 }
  0x1e   : > { %p713_p8 = pnand %p712_p7, %p708_p3 }
  0x20   : > { %716 = shalt.err (!%p713_p8)
}
  0x21   : > { %s717_s17 = scalar_lea.vmem %s893_s3, 16384  ;;  %s798_s18 = smov [#allocation3]  }
  0x22   : > { %p718_p10 = scmp.ne.s32.totalorder %s893_s3, %s717_s17  ;;  %s722_s20 = sshll.u32 %s798_s18, 4  ;;  %s723_s20 = int_to_ptr.vmem [resolvable:$false] %s722_s20 }
  0x23   : > { %s724_s24 = scalar_lea.vmem %s723_s20, 32768  ;;  %p725_p2 = scmp.lt.s32.totalorder %s893_s3, %s723_s20 }
  0x24   : > { %p720_p9 = pnand %p718_p10, %p706_p1  ;;  %p726_p12 = scmp.lt.s32.totalorder %s724_s24, %s717_s17 }
  0x26   : > { %p721_p0 = pneg %p720_p9  ;;  %p727_p11 = por %p726_p12, %p725_p2 }
  0x28   : > { %p728_p6 = pnand %p727_p11, %p721_p0 }
  0x2a   : > { %731 = shalt.err (!%p728_p6)
}
  0x2b   : > { %s799_s25 = smov 128   ;;  %s800_s26 = smov 8  }
  0x2c   : > { %661 = dma.hbm_to_vmem [thread:$0]  (!%p889_p13), %s885_s29, 16384, %s893_s3, %s895_s5, %s799_s25, %s799_s25, %s800_s26  }
  0x2d   : > { %p644_p9 = scmp.ge.s32.totalorder %s796_s14, 1  ;;  %p132_p1 = scmp.lt.s32.totalorder %s796_s14, 3 }
  0x2f   : > { %p133_p3 = pnand %p644_p9, %p132_p1 }
  0x30   : > { %s919_s27 = sand.u32 (!%p133_p3), 1, %s788_s12   ;;  %p1377_p6 = scmp.ne.s32.totalorder (!%p133_p3), %s1373_s21, 0 }
  0x31   : > { %136 = sbr.rel (%p133_p3) target bundleno = 141 (0x8d), region = 28  ;;  %s645_s28 = sshll.u32 (!%p133_p3), %s919_s27, 10 }
  0x32   : > { %s139_s30 = scalar_lea.sflag (!%p133_p3), [#allocation4], %s919_s27  ;;  %s923_s6 = scalar_lea.vmem (!%p133_p3), [#allocation3], %s645_s28 }
  0x36   : > { %775 = dma.done.wait (%p1377_p6), %s139_s30, 16384  }
  0x37   : > { %777 = vsyncadd (%p1377_p6), %s139_s30, 4294950912  ;;  %s293_s29 = sld [smem:[#allocation2]]  ;;  %v165_v0 = vld [vmem:[%s923_s6] sm:$0xff]  ;;  %v166_v2 = vld [vmem:[%s923_s6 + $0x8] sm:$0xff]  ;;  %s946_s21 = scalar_lea.vmem [#allocation6], %s645_s28 }
  0x38   : > { %v167_v3 = vld [vmem:[%s923_s6 + $0x10] sm:$0xff]  ;;  %v168_v7 = vld [vmem:[%s923_s6 + $0x18] sm:$0xff]  ;;  %v169_v8 = vld [vmem:[%s923_s6 + $0x20] sm:$0xff]  ;;  %s653_s3 = sshll.u32 %s843_s0, 14  ;;  %s565_s4 = sshll.u32 %s946_s21, 4  ;;  %s1314_s4 = int_to_ptr.vmem [resolvable:$true] %s565_s4 }
  0x39   : > { %v170_v9 = vld [vmem:[%s923_s6 + $0x28] sm:$0xff]  ;;  %v171_v13 = vld [vmem:[%s923_s6 + $0x30] sm:$0xff]  ;;  %v172_v14 = vld [vmem:[%s923_s6 + $0x38] sm:$0xff]  ;;  %s1312_s7 = scalar_lea.hbm %s1369_s2, %s653_s3  ;;  %s552_s8 = scalar_lea.sflag [#allocation5], %s919_s27 }
  0x3a   : > { %v173_v15 = vld [vmem:[%s923_s6 + $0x40] sm:$0xff]  ;;  %v174_v19 = vld [vmem:[%s923_s6 + $0x48] sm:$0xff]  ;;  %v175_v20 = vld [vmem:[%s923_s6 + $0x50] sm:$0xff]  ;;  %s732_s9 = scalar_lea.vmem %s1314_s4, 16384  ;;  %p1378_p12 = scmp.ne.s32.totalorder %s1374_s22, 0 }
  0x3b   : > { %v176_v21 = vld [vmem:[%s923_s6 + $0x58] sm:$0xff]  ;;  %v177_v25 = vld [vmem:[%s923_s6 + $0x60] sm:$0xff]  ;;  %v178_v26 = vld [vmem:[%s923_s6 + $0x68] sm:$0xff]  ;;  %p733_p11 = scmp.ne.s32.totalorder %s1314_s4, %s732_s9  ;;  %s801_s10 = smov [#allocation6]  }
  0x3c   : > { %v179_v27 = vld [vmem:[%s923_s6 + $0x70] sm:$0xff]  ;;  %v180_v31 = vld [vmem:[%s923_s6 + $0x78] sm:$0xff]  ;;  %v181_v32 = vld [vmem:[%s923_s6 + $0x80] sm:$0xff]  ;;  %s736_s15 = sshll.u32 %s801_s10, 4  ;;  %s737_s15 = int_to_ptr.vmem [resolvable:$false] %s736_s15 }
  0x3d   : > { %v930_v1 = vstv %s293_s29  ;;  %v182_v33 = vld [vmem:[%s923_s6 + $0x88] sm:$0xff]  ;;  %v183_v37 = vld [vmem:[%s923_s6 + $0x90] sm:$0xff]  ;;  %v184_v38 = vld [vmem:[%s923_s6 + $0x98] sm:$0xff]  ;;  %p734_p13 = pnand %p733_p11, %p1378_p12  ;;  %s738_s17 = scalar_lea.vmem %s737_s15, 32768 }
  0x3e   : > { %v295_v4 = vmul.f32 %v930_v1, %v165_v0  ;;  %v296_v5 = vmul.f32 %v930_v1, %v166_v2  ;;  %v297_v6 = vmul.f32 %v930_v1, %v167_v3  ;;  %v298_v10 = vmul.f32 %v930_v1, %v168_v7  ;;  %v185_v39 = vld [vmem:[%s923_s6 + $0xa0] sm:$0xff]  ;;  %v186_v43 = vld [vmem:[%s923_s6 + $0xa8] sm:$0xff]  ;;  %v187_v44 = vld [vmem:[%s923_s6 + $0xb0] sm:$0xff]  ;;  %p739_p5 = scmp.lt.s32.totalorder %s1314_s4, %s737_s15  ;;  %p740_p7 = scmp.lt.s32.totalorder %s738_s17, %s732_s9 }
  0x3f   : > { %v299_v11 = vmul.f32 %v930_v1, %v169_v8  ;;  %v300_v12 = vmul.f32 %v930_v1, %v170_v9  ;;  %v301_v16 = vmul.f32 %v930_v1, %v171_v13  ;;  %v302_v17 = vmul.f32 %v930_v1, %v172_v14  ;;  %v188_v45 = vld [vmem:[%s923_s6 + $0xb8] sm:$0xff]  ;;  %v189_v49 = vld [vmem:[%s923_s6 + $0xc0] sm:$0xff]  ;;  %v190_v50 = vld [vmem:[%s923_s6 + $0xc8] sm:$0xff]  ;;  %p735_p4 = pneg %p734_p13 }
  0x40   : > { %423 = vst [vmem:[%s946_s21] sm:$0xff] %v295_v4  ;;  %424 = vst [vmem:[%s946_s21 + $0x8] sm:$0xff] %v296_v5  ;;  %v303_v18 = vmul.f32 %v930_v1, %v173_v15  ;;  %v304_v22 = vmul.f32 %v930_v1, %v174_v19  ;;  %v305_v23 = vmul.f32 %v930_v1, %v175_v20  ;;  %v191_v51 = vld [vmem:[%s923_s6 + $0xd0] sm:$0xff]  ;;  %v192_v55 = vld [vmem:[%s923_s6 + $0xd8] sm:$0xff]  ;;  %p741_p8 = por %p740_p7, %p739_p5 }
  0x41   : > { %425 = vst [vmem:[%s946_s21 + $0x10] sm:$0xff] %v297_v6  ;;  %426 = vst [vmem:[%s946_s21 + $0x18] sm:$0xff] %v298_v10  ;;  %v306_v24 = vmul.f32 %v930_v1, %v176_v21  ;;  %v307_v28 = vmul.f32 %v930_v1, %v177_v25  ;;  %v308_v29 = vmul.f32 %v930_v1, %v178_v26  ;;  %v193_v56 = vld [vmem:[%s923_s6 + $0xe0] sm:$0xff]  ;;  %v194_v57 = vld [vmem:[%s923_s6 + $0xe8] sm:$0xff] }
  0x42   : > { %427 = vst [vmem:[%s946_s21 + $0x20] sm:$0xff] %v299_v11  ;;  %428 = vst [vmem:[%s946_s21 + $0x28] sm:$0xff] %v300_v12  ;;  %v309_v30 = vmul.f32 %v930_v1, %v179_v27  ;;  %v310_v34 = vmul.f32 %v930_v1, %v180_v31  ;;  %v311_v35 = vmul.f32 %v930_v1, %v181_v32  ;;  %v195_v61 = vld [vmem:[%s923_s6 + $0xf0] sm:$0xff]  ;;  %v196_v62 = vld [vmem:[%s923_s6 + $0xf8] sm:$0xff]  ;;  %p742_p10 = pnand %p741_p8, %p735_p4 }
  0x43   : > { %429 = vst [vmem:[%s946_s21 + $0x30] sm:$0xff] %v301_v16  ;;  %430 = vst [vmem:[%s946_s21 + $0x38] sm:$0xff] %v302_v17  ;;  %v312_v36 = vmul.f32 %v930_v1, %v182_v33  ;;  %v313_v40 = vmul.f32 %v930_v1, %v183_v37  ;;  %v314_v41 = vmul.f32 %v930_v1, %v184_v38  ;;  %v197_v63 = vld [vmem:[%s923_s6 + $0x100] sm:$0xff]  ;;  %v198_v4 = vld [vmem:[%s923_s6 + $0x108] sm:$0xff] }
  0x44   : > { %431 = vst [vmem:[%s946_s21 + $0x40] sm:$0xff] %v303_v18  ;;  %432 = vst [vmem:[%s946_s21 + $0x48] sm:$0xff] %v304_v22  ;;  %v315_v42 = vmul.f32 %v930_v1, %v185_v39  ;;  %v316_v46 = vmul.f32 %v930_v1, %v186_v43  ;;  %v317_v47 = vmul.f32 %v930_v1, %v187_v44  ;;  %v199_v5 = vld [vmem:[%s923_s6 + $0x110] sm:$0xff]  ;;  %v200_v6 = vld [vmem:[%s923_s6 + $0x118] sm:$0xff] }
  0x45   : > { %433 = vst [vmem:[%s946_s21 + $0x50] sm:$0xff] %v305_v23  ;;  %434 = vst [vmem:[%s946_s21 + $0x58] sm:$0xff] %v306_v24  ;;  %v318_v48 = vmul.f32 %v930_v1, %v188_v45  ;;  %v319_v52 = vmul.f32 %v930_v1, %v189_v49  ;;  %v320_v53 = vmul.f32 %v930_v1, %v190_v50  ;;  %v201_v10 = vld [vmem:[%s923_s6 + $0x120] sm:$0xff]  ;;  %v202_v11 = vld [vmem:[%s923_s6 + $0x128] sm:$0xff] }
  0x46   : > { %435 = vst [vmem:[%s946_s21 + $0x60] sm:$0xff] %v307_v28  ;;  %436 = vst [vmem:[%s946_s21 + $0x68] sm:$0xff] %v308_v29  ;;  %v321_v54 = vmul.f32 %v930_v1, %v191_v51  ;;  %v322_v58 = vmul.f32 %v930_v1, %v192_v55  ;;  %v323_v59 = vmul.f32 %v930_v1, %v193_v56  ;;  %v203_v12 = vld [vmem:[%s923_s6 + $0x130] sm:$0xff]  ;;  %v204_v16 = vld [vmem:[%s923_s6 + $0x138] sm:$0xff] }
  0x47   : > { %437 = vst [vmem:[%s946_s21 + $0x70] sm:$0xff] %v309_v30  ;;  %438 = vst [vmem:[%s946_s21 + $0x78] sm:$0xff] %v310_v34  ;;  %v324_v60 = vmul.f32 %v930_v1, %v194_v57  ;;  %v325_v0 = vmul.f32 %v930_v1, %v195_v61  ;;  %v326_v2 = vmul.f32 %v930_v1, %v196_v62  ;;  %v205_v17 = vld [vmem:[%s923_s6 + $0x140] sm:$0xff]  ;;  %v206_v18 = vld [vmem:[%s923_s6 + $0x148] sm:$0xff] }
  0x48   : > { %439 = vst [vmem:[%s946_s21 + $0x80] sm:$0xff] %v311_v35  ;;  %440 = vst [vmem:[%s946_s21 + $0x88] sm:$0xff] %v312_v36  ;;  %v327_v3 = vmul.f32 %v930_v1, %v197_v63  ;;  %v328_v7 = vmul.f32 %v930_v1, %v198_v4  ;;  %v329_v8 = vmul.f32 %v930_v1, %v199_v5  ;;  %v207_v22 = vld [vmem:[%s923_s6 + $0x150] sm:$0xff]  ;;  %v208_v23 = vld [vmem:[%s923_s6 + $0x158] sm:$0xff] }
  0x49   : > { %441 = vst [vmem:[%s946_s21 + $0x90] sm:$0xff] %v313_v40  ;;  %442 = vst [vmem:[%s946_s21 + $0x98] sm:$0xff] %v314_v41  ;;  %v330_v9 = vmul.f32 %v930_v1, %v200_v6  ;;  %v331_v13 = vmul.f32 %v930_v1, %v201_v10  ;;  %v332_v14 = vmul.f32 %v930_v1, %v202_v11  ;;  %v209_v24 = vld [vmem:[%s923_s6 + $0x160] sm:$0xff]  ;;  %v210_v28 = vld [vmem:[%s923_s6 + $0x168] sm:$0xff] }
  0x4a   : > { %443 = vst [vmem:[%s946_s21 + $0xa0] sm:$0xff] %v315_v42  ;;  %444 = vst [vmem:[%s946_s21 + $0xa8] sm:$0xff] %v316_v46  ;;  %v333_v15 = vmul.f32 %v930_v1, %v203_v12  ;;  %v334_v19 = vmul.f32 %v930_v1, %v204_v16  ;;  %v335_v20 = vmul.f32 %v930_v1, %v205_v17  ;;  %v211_v29 = vld [vmem:[%s923_s6 + $0x170] sm:$0xff]  ;;  %v212_v30 = vld [vmem:[%s923_s6 + $0x178] sm:$0xff] }
  0x4b   : > { %445 = vst [vmem:[%s946_s21 + $0xb0] sm:$0xff] %v317_v47  ;;  %446 = vst [vmem:[%s946_s21 + $0xb8] sm:$0xff] %v318_v48  ;;  %v336_v21 = vmul.f32 %v930_v1, %v206_v18  ;;  %v337_v25 = vmul.f32 %v930_v1, %v207_v22  ;;  %v338_v26 = vmul.f32 %v930_v1, %v208_v23  ;;  %v213_v34 = vld [vmem:[%s923_s6 + $0x180] sm:$0xff]  ;;  %v214_v35 = vld [vmem:[%s923_s6 + $0x188] sm:$0xff] }
  0x4c   : > { %447 = vst [vmem:[%s946_s21 + $0xc0] sm:$0xff] %v319_v52  ;;  %448 = vst [vmem:[%s946_s21 + $0xc8] sm:$0xff] %v320_v53  ;;  %v339_v27 = vmul.f32 %v930_v1, %v209_v24  ;;  %v340_v31 = vmul.f32 %v930_v1, %v210_v28  ;;  %v341_v32 = vmul.f32 %v930_v1, %v211_v29  ;;  %v215_v36 = vld [vmem:[%s923_s6 + $0x190] sm:$0xff]  ;;  %v216_v40 = vld [vmem:[%s923_s6 + $0x198] sm:$0xff] }
  0x4d   : > { %449 = vst [vmem:[%s946_s21 + $0xd0] sm:$0xff] %v321_v54  ;;  %450 = vst [vmem:[%s946_s21 + $0xd8] sm:$0xff] %v322_v58  ;;  %v342_v33 = vmul.f32 %v930_v1, %v212_v30  ;;  %v343_v37 = vmul.f32 %v930_v1, %v213_v34  ;;  %v344_v38 = vmul.f32 %v930_v1, %v214_v35  ;;  %v217_v41 = vld [vmem:[%s923_s6 + $0x1a0] sm:$0xff]  ;;  %v218_v42 = vld [vmem:[%s923_s6 + $0x1a8] sm:$0xff] }
  0x4e   : > { %451 = vst [vmem:[%s946_s21 + $0xe0] sm:$0xff] %v323_v59  ;;  %452 = vst [vmem:[%s946_s21 + $0xe8] sm:$0xff] %v324_v60  ;;  %v345_v39 = vmul.f32 %v930_v1, %v215_v36  ;;  %v346_v43 = vmul.f32 %v930_v1, %v216_v40  ;;  %v347_v44 = vmul.f32 %v930_v1, %v217_v41  ;;  %v219_v46 = vld [vmem:[%s923_s6 + $0x1b0] sm:$0xff]  ;;  %v220_v47 = vld [vmem:[%s923_s6 + $0x1b8] sm:$0xff] }
  0x4f   : > { %453 = vst [vmem:[%s946_s21 + $0xf0] sm:$0xff] %v325_v0  ;;  %454 = vst [vmem:[%s946_s21 + $0xf8] sm:$0xff] %v326_v2  ;;  %v348_v45 = vmul.f32 %v930_v1, %v218_v42  ;;  %v221_v48 = vld [vmem:[%s923_s6 + $0x1c0] sm:$0xff]  ;;  %v349_v49 = vmul.f32 %v930_v1, %v219_v46  ;;  %v350_v50 = vmul.f32 %v930_v1, %v220_v47  ;;  %v222_v52 = vld [vmem:[%s923_s6 + $0x1c8] sm:$0xff] }
  0x50   : > { %455 = vst [vmem:[%s946_s21 + $0x100] sm:$0xff] %v327_v3  ;;  %456 = vst [vmem:[%s946_s21 + $0x108] sm:$0xff] %v328_v7  ;;  %v351_v51 = vmul.f32 %v930_v1, %v221_v48  ;;  %v223_v53 = vld [vmem:[%s923_s6 + $0x1d0] sm:$0xff]  ;;  %v224_v54 = vld [vmem:[%s923_s6 + $0x1d8] sm:$0xff]  ;;  %v352_v55 = vmul.f32 %v930_v1, %v222_v52 }
  0x51   : > { %457 = vst [vmem:[%s946_s21 + $0x110] sm:$0xff] %v329_v8  ;;  %458 = vst [vmem:[%s946_s21 + $0x118] sm:$0xff] %v330_v9  ;;  %v353_v56 = vmul.f32 %v930_v1, %v223_v53  ;;  %v354_v57 = vmul.f32 %v930_v1, %v224_v54  ;;  %v225_v58 = vld [vmem:[%s923_s6 + $0x1e0] sm:$0xff]  ;;  %v226_v59 = vld [vmem:[%s923_s6 + $0x1e8] sm:$0xff] }
  0x52   : > { %459 = vst [vmem:[%s946_s21 + $0x120] sm:$0xff] %v331_v13  ;;  %460 = vst [vmem:[%s946_s21 + $0x128] sm:$0xff] %v332_v14  ;;  %v227_v60 = vld [vmem:[%s923_s6 + $0x1f0] sm:$0xff]  ;;  %v355_v61 = vmul.f32 %v930_v1, %v225_v58  ;;  %v356_v62 = vmul.f32 %v930_v1, %v226_v59  ;;  %v228_v0 = vld [vmem:[%s923_s6 + $0x1f8] sm:$0xff] }
  0x53   : > { %461 = vst [vmem:[%s946_s21 + $0x130] sm:$0xff] %v333_v15  ;;  %462 = vst [vmem:[%s946_s21 + $0x138] sm:$0xff] %v334_v19  ;;  %v357_v63 = vmul.f32 %v930_v1, %v227_v60  ;;  %v229_v2 = vld [vmem:[%s923_s6 + $0x200] sm:$0xff]  ;;  %v230_v3 = vld [vmem:[%s923_s6 + $0x208] sm:$0xff]  ;;  %v358_v4 = vmul.f32 %v930_v1, %v228_v0 }
  0x54   : > { %463 = vst [vmem:[%s946_s21 + $0x140] sm:$0xff] %v335_v20  ;;  %464 = vst [vmem:[%s946_s21 + $0x148] sm:$0xff] %v336_v21  ;;  %v359_v5 = vmul.f32 %v930_v1, %v229_v2  ;;  %v360_v6 = vmul.f32 %v930_v1, %v230_v3  ;;  %v231_v7 = vld [vmem:[%s923_s6 + $0x210] sm:$0xff]  ;;  %v232_v8 = vld [vmem:[%s923_s6 + $0x218] sm:$0xff] }
  0x55   : > { %465 = vst [vmem:[%s946_s21 + $0x150] sm:$0xff] %v337_v25  ;;  %466 = vst [vmem:[%s946_s21 + $0x158] sm:$0xff] %v338_v26  ;;  %v233_v9 = vld [vmem:[%s923_s6 + $0x220] sm:$0xff]  ;;  %v361_v10 = vmul.f32 %v930_v1, %v231_v7  ;;  %v362_v11 = vmul.f32 %v930_v1, %v232_v8  ;;  %v234_v13 = vld [vmem:[%s923_s6 + $0x228] sm:$0xff] }
  0x56   : > { %467 = vst [vmem:[%s946_s21 + $0x160] sm:$0xff] %v339_v27  ;;  %468 = vst [vmem:[%s946_s21 + $0x168] sm:$0xff] %v340_v31  ;;  %v363_v12 = vmul.f32 %v930_v1, %v233_v9  ;;  %v235_v14 = vld [vmem:[%s923_s6 + $0x230] sm:$0xff]  ;;  %v236_v15 = vld [vmem:[%s923_s6 + $0x238] sm:$0xff]  ;;  %v364_v16 = vmul.f32 %v930_v1, %v234_v13 }
  0x57   : > { %469 = vst [vmem:[%s946_s21 + $0x170] sm:$0xff] %v341_v32  ;;  %470 = vst [vmem:[%s946_s21 + $0x178] sm:$0xff] %v342_v33  ;;  %v365_v17 = vmul.f32 %v930_v1, %v235_v14  ;;  %v366_v18 = vmul.f32 %v930_v1, %v236_v15  ;;  %v237_v19 = vld [vmem:[%s923_s6 + $0x240] sm:$0xff]  ;;  %v238_v20 = vld [vmem:[%s923_s6 + $0x248] sm:$0xff] }
  0x58   : > { %471 = vst [vmem:[%s946_s21 + $0x180] sm:$0xff] %v343_v37  ;;  %472 = vst [vmem:[%s946_s21 + $0x188] sm:$0xff] %v344_v38  ;;  %v239_v21 = vld [vmem:[%s923_s6 + $0x250] sm:$0xff]  ;;  %v367_v22 = vmul.f32 %v930_v1, %v237_v19  ;;  %v368_v23 = vmul.f32 %v930_v1, %v238_v20  ;;  %v240_v25 = vld [vmem:[%s923_s6 + $0x258] sm:$0xff] }
  0x59   : > { %473 = vst [vmem:[%s946_s21 + $0x190] sm:$0xff] %v345_v39  ;;  %474 = vst [vmem:[%s946_s21 + $0x198] sm:$0xff] %v346_v43  ;;  %v369_v24 = vmul.f32 %v930_v1, %v239_v21  ;;  %v241_v26 = vld [vmem:[%s923_s6 + $0x260] sm:$0xff]  ;;  %v242_v27 = vld [vmem:[%s923_s6 + $0x268] sm:$0xff]  ;;  %v370_v28 = vmul.f32 %v930_v1, %v240_v25 }
  0x5a   : > { %475 = vst [vmem:[%s946_s21 + $0x1a0] sm:$0xff] %v347_v44  ;;  %476 = vst [vmem:[%s946_s21 + $0x1a8] sm:$0xff] %v348_v45  ;;  %v371_v29 = vmul.f32 %v930_v1, %v241_v26  ;;  %v372_v30 = vmul.f32 %v930_v1, %v242_v27  ;;  %v243_v31 = vld [vmem:[%s923_s6 + $0x270] sm:$0xff]  ;;  %v244_v32 = vld [vmem:[%s923_s6 + $0x278] sm:$0xff] }
  0x5b   : > { %477 = vst [vmem:[%s946_s21 + $0x1b0] sm:$0xff] %v349_v49  ;;  %478 = vst [vmem:[%s946_s21 + $0x1b8] sm:$0xff] %v350_v50  ;;  %v245_v33 = vld [vmem:[%s923_s6 + $0x280] sm:$0xff]  ;;  %v373_v34 = vmul.f32 %v930_v1, %v243_v31  ;;  %v374_v35 = vmul.f32 %v930_v1, %v244_v32  ;;  %v246_v37 = vld [vmem:[%s923_s6 + $0x288] sm:$0xff] }
  0x5c   : > { %479 = vst [vmem:[%s946_s21 + $0x1c0] sm:$0xff] %v351_v51  ;;  %480 = vst [vmem:[%s946_s21 + $0x1c8] sm:$0xff] %v352_v55  ;;  %v375_v36 = vmul.f32 %v930_v1, %v245_v33  ;;  %v247_v38 = vld [vmem:[%s923_s6 + $0x290] sm:$0xff]  ;;  %v248_v39 = vld [vmem:[%s923_s6 + $0x298] sm:$0xff]  ;;  %v376_v40 = vmul.f32 %v930_v1, %v246_v37 }
  0x5d   : > { %481 = vst [vmem:[%s946_s21 + $0x1d0] sm:$0xff] %v353_v56  ;;  %482 = vst [vmem:[%s946_s21 + $0x1d8] sm:$0xff] %v354_v57  ;;  %v377_v41 = vmul.f32 %v930_v1, %v247_v38  ;;  %v378_v42 = vmul.f32 %v930_v1, %v248_v39  ;;  %v249_v43 = vld [vmem:[%s923_s6 + $0x2a0] sm:$0xff]  ;;  %v250_v44 = vld [vmem:[%s923_s6 + $0x2a8] sm:$0xff] }
  0x5e   : > { %483 = vst [vmem:[%s946_s21 + $0x1e0] sm:$0xff] %v355_v61  ;;  %484 = vst [vmem:[%s946_s21 + $0x1e8] sm:$0xff] %v356_v62  ;;  %v251_v45 = vld [vmem:[%s923_s6 + $0x2b0] sm:$0xff]  ;;  %v379_v46 = vmul.f32 %v930_v1, %v249_v43  ;;  %v380_v47 = vmul.f32 %v930_v1, %v250_v44  ;;  %v252_v49 = vld [vmem:[%s923_s6 + $0x2b8] sm:$0xff] }
  0x5f   : > { %485 = vst [vmem:[%s946_s21 + $0x1f0] sm:$0xff] %v357_v63  ;;  %486 = vst [vmem:[%s946_s21 + $0x1f8] sm:$0xff] %v358_v4  ;;  %v381_v48 = vmul.f32 %v930_v1, %v251_v45  ;;  %v253_v50 = vld [vmem:[%s923_s6 + $0x2c0] sm:$0xff]  ;;  %v254_v51 = vld [vmem:[%s923_s6 + $0x2c8] sm:$0xff]  ;;  %v382_v52 = vmul.f32 %v930_v1, %v252_v49 }
  0x60   : > { %487 = vst [vmem:[%s946_s21 + $0x200] sm:$0xff] %v359_v5  ;;  %488 = vst [vmem:[%s946_s21 + $0x208] sm:$0xff] %v360_v6  ;;  %v383_v53 = vmul.f32 %v930_v1, %v253_v50  ;;  %v384_v54 = vmul.f32 %v930_v1, %v254_v51  ;;  %v255_v55 = vld [vmem:[%s923_s6 + $0x2d0] sm:$0xff]  ;;  %v256_v56 = vld [vmem:[%s923_s6 + $0x2d8] sm:$0xff] }
  0x61   : > { %489 = vst [vmem:[%s946_s21 + $0x210] sm:$0xff] %v361_v10  ;;  %490 = vst [vmem:[%s946_s21 + $0x218] sm:$0xff] %v362_v11  ;;  %v257_v57 = vld [vmem:[%s923_s6 + $0x2e0] sm:$0xff]  ;;  %v385_v58 = vmul.f32 %v930_v1, %v255_v55  ;;  %v386_v59 = vmul.f32 %v930_v1, %v256_v56  ;;  %v258_v61 = vld [vmem:[%s923_s6 + $0x2e8] sm:$0xff] }
  0x62   : > { %491 = vst [vmem:[%s946_s21 + $0x220] sm:$0xff] %v363_v12  ;;  %492 = vst [vmem:[%s946_s21 + $0x228] sm:$0xff] %v364_v16  ;;  %v387_v60 = vmul.f32 %v930_v1, %v257_v57  ;;  %v259_v62 = vld [vmem:[%s923_s6 + $0x2f0] sm:$0xff]  ;;  %v260_v63 = vld [vmem:[%s923_s6 + $0x2f8] sm:$0xff]  ;;  %v388_v0 = vmul.f32 %v930_v1, %v258_v61 }
  0x63   : > { %493 = vst [vmem:[%s946_s21 + $0x230] sm:$0xff] %v365_v17  ;;  %494 = vst [vmem:[%s946_s21 + $0x238] sm:$0xff] %v366_v18  ;;  %v389_v2 = vmul.f32 %v930_v1, %v259_v62  ;;  %v390_v3 = vmul.f32 %v930_v1, %v260_v63  ;;  %v261_v4 = vld [vmem:[%s923_s6 + $0x300] sm:$0xff]  ;;  %v262_v5 = vld [vmem:[%s923_s6 + $0x308] sm:$0xff] }
  0x64   : > { %495 = vst [vmem:[%s946_s21 + $0x240] sm:$0xff] %v367_v22  ;;  %496 = vst [vmem:[%s946_s21 + $0x248] sm:$0xff] %v368_v23  ;;  %v263_v6 = vld [vmem:[%s923_s6 + $0x310] sm:$0xff]  ;;  %v391_v7 = vmul.f32 %v930_v1, %v261_v4  ;;  %v392_v8 = vmul.f32 %v930_v1, %v262_v5  ;;  %v264_v10 = vld [vmem:[%s923_s6 + $0x318] sm:$0xff] }
  0x65   : > { %497 = vst [vmem:[%s946_s21 + $0x250] sm:$0xff] %v369_v24  ;;  %498 = vst [vmem:[%s946_s21 + $0x258] sm:$0xff] %v370_v28  ;;  %v393_v9 = vmul.f32 %v930_v1, %v263_v6  ;;  %v265_v11 = vld [vmem:[%s923_s6 + $0x320] sm:$0xff]  ;;  %v266_v12 = vld [vmem:[%s923_s6 + $0x328] sm:$0xff]  ;;  %v394_v13 = vmul.f32 %v930_v1, %v264_v10 }
  0x66   : > { %499 = vst [vmem:[%s946_s21 + $0x260] sm:$0xff] %v371_v29  ;;  %500 = vst [vmem:[%s946_s21 + $0x268] sm:$0xff] %v372_v30  ;;  %v395_v14 = vmul.f32 %v930_v1, %v265_v11  ;;  %v396_v15 = vmul.f32 %v930_v1, %v266_v12  ;;  %v267_v16 = vld [vmem:[%s923_s6 + $0x330] sm:$0xff]  ;;  %v268_v17 = vld [vmem:[%s923_s6 + $0x338] sm:$0xff] }
  0x67   : > { %501 = vst [vmem:[%s946_s21 + $0x270] sm:$0xff] %v373_v34  ;;  %502 = vst [vmem:[%s946_s21 + $0x278] sm:$0xff] %v374_v35  ;;  %v269_v18 = vld [vmem:[%s923_s6 + $0x340] sm:$0xff]  ;;  %v397_v19 = vmul.f32 %v930_v1, %v267_v16  ;;  %v398_v20 = vmul.f32 %v930_v1, %v268_v17  ;;  %v270_v22 = vld [vmem:[%s923_s6 + $0x348] sm:$0xff] }
  0x68   : > { %503 = vst [vmem:[%s946_s21 + $0x280] sm:$0xff] %v375_v36  ;;  %504 = vst [vmem:[%s946_s21 + $0x288] sm:$0xff] %v376_v40  ;;  %v399_v21 = vmul.f32 %v930_v1, %v269_v18  ;;  %v271_v23 = vld [vmem:[%s923_s6 + $0x350] sm:$0xff]  ;;  %v272_v24 = vld [vmem:[%s923_s6 + $0x358] sm:$0xff]  ;;  %v400_v25 = vmul.f32 %v930_v1, %v270_v22 }
  0x69   : > { %505 = vst [vmem:[%s946_s21 + $0x290] sm:$0xff] %v377_v41  ;;  %506 = vst [vmem:[%s946_s21 + $0x298] sm:$0xff] %v378_v42  ;;  %v401_v26 = vmul.f32 %v930_v1, %v271_v23  ;;  %v402_v27 = vmul.f32 %v930_v1, %v272_v24  ;;  %v273_v28 = vld [vmem:[%s923_s6 + $0x360] sm:$0xff]  ;;  %v274_v29 = vld [vmem:[%s923_s6 + $0x368] sm:$0xff] }
  0x6a   : > { %507 = vst [vmem:[%s946_s21 + $0x2a0] sm:$0xff] %v379_v46  ;;  %508 = vst [vmem:[%s946_s21 + $0x2a8] sm:$0xff] %v380_v47  ;;  %v275_v30 = vld [vmem:[%s923_s6 + $0x370] sm:$0xff]  ;;  %v403_v31 = vmul.f32 %v930_v1, %v273_v28  ;;  %v404_v32 = vmul.f32 %v930_v1, %v274_v29  ;;  %v276_v34 = vld [vmem:[%s923_s6 + $0x378] sm:$0xff] }
  0x6b   : > { %509 = vst [vmem:[%s946_s21 + $0x2b0] sm:$0xff] %v381_v48  ;;  %510 = vst [vmem:[%s946_s21 + $0x2b8] sm:$0xff] %v382_v52  ;;  %v405_v33 = vmul.f32 %v930_v1, %v275_v30  ;;  %v277_v35 = vld [vmem:[%s923_s6 + $0x380] sm:$0xff]  ;;  %v278_v36 = vld [vmem:[%s923_s6 + $0x388] sm:$0xff]  ;;  %v406_v37 = vmul.f32 %v930_v1, %v276_v34 }
  0x6c   : > { %511 = vst [vmem:[%s946_s21 + $0x2c0] sm:$0xff] %v383_v53  ;;  %512 = vst [vmem:[%s946_s21 + $0x2c8] sm:$0xff] %v384_v54  ;;  %v407_v38 = vmul.f32 %v930_v1, %v277_v35  ;;  %v408_v39 = vmul.f32 %v930_v1, %v278_v36  ;;  %v279_v40 = vld [vmem:[%s923_s6 + $0x390] sm:$0xff]  ;;  %v280_v41 = vld [vmem:[%s923_s6 + $0x398] sm:$0xff] }
  0x6d   : > { %513 = vst [vmem:[%s946_s21 + $0x2d0] sm:$0xff] %v385_v58  ;;  %514 = vst [vmem:[%s946_s21 + $0x2d8] sm:$0xff] %v386_v59  ;;  %v281_v42 = vld [vmem:[%s923_s6 + $0x3a0] sm:$0xff]  ;;  %v409_v43 = vmul.f32 %v930_v1, %v279_v40  ;;  %v410_v44 = vmul.f32 %v930_v1, %v280_v41  ;;  %v282_v46 = vld [vmem:[%s923_s6 + $0x3a8] sm:$0xff] }
  0x6e   : > { %515 = vst [vmem:[%s946_s21 + $0x2e0] sm:$0xff] %v387_v60  ;;  %516 = vst [vmem:[%s946_s21 + $0x2e8] sm:$0xff] %v388_v0  ;;  %v411_v45 = vmul.f32 %v930_v1, %v281_v42  ;;  %v283_v47 = vld [vmem:[%s923_s6 + $0x3b0] sm:$0xff]  ;;  %v284_v48 = vld [vmem:[%s923_s6 + $0x3b8] sm:$0xff]  ;;  %v412_v49 = vmul.f32 %v930_v1, %v282_v46 }
  0x6f   : > { %517 = vst [vmem:[%s946_s21 + $0x2f0] sm:$0xff] %v389_v2  ;;  %518 = vst [vmem:[%s946_s21 + $0x2f8] sm:$0xff] %v390_v3  ;;  %v413_v50 = vmul.f32 %v930_v1, %v283_v47  ;;  %v414_v51 = vmul.f32 %v930_v1, %v284_v48  ;;  %v285_v52 = vld [vmem:[%s923_s6 + $0x3c0] sm:$0xff]  ;;  %v286_v53 = vld [vmem:[%s923_s6 + $0x3c8] sm:$0xff] }
  0x70   : > { %519 = vst [vmem:[%s946_s21 + $0x300] sm:$0xff] %v391_v7  ;;  %520 = vst [vmem:[%s946_s21 + $0x308] sm:$0xff] %v392_v8  ;;  %v287_v54 = vld [vmem:[%s923_s6 + $0x3d0] sm:$0xff]  ;;  %v415_v55 = vmul.f32 %v930_v1, %v285_v52  ;;  %v416_v56 = vmul.f32 %v930_v1, %v286_v53  ;;  %v288_v58 = vld [vmem:[%s923_s6 + $0x3d8] sm:$0xff] }
  0x71   : > { %521 = vst [vmem:[%s946_s21 + $0x310] sm:$0xff] %v393_v9  ;;  %522 = vst [vmem:[%s946_s21 + $0x318] sm:$0xff] %v394_v13  ;;  %v417_v57 = vmul.f32 %v930_v1, %v287_v54  ;;  %v289_v59 = vld [vmem:[%s923_s6 + $0x3e0] sm:$0xff]  ;;  %v290_v60 = vld [vmem:[%s923_s6 + $0x3e8] sm:$0xff]  ;;  %v418_v61 = vmul.f32 %v930_v1, %v288_v58 }
  0x72   : > { %523 = vst [vmem:[%s946_s21 + $0x320] sm:$0xff] %v395_v14  ;;  %524 = vst [vmem:[%s946_s21 + $0x328] sm:$0xff] %v396_v15  ;;  %v419_v62 = vmul.f32 %v930_v1, %v289_v59  ;;  %v420_v63 = vmul.f32 %v930_v1, %v290_v60  ;;  %v291_v0 = vld [vmem:[%s923_s6 + $0x3f0] sm:$0xff]  ;;  %v292_v2 = vld [vmem:[%s923_s6 + $0x3f8] sm:$0xff] }
  0x73   : > { %525 = vst [vmem:[%s946_s21 + $0x330] sm:$0xff] %v397_v19  ;;  %526 = vst [vmem:[%s946_s21 + $0x338] sm:$0xff] %v398_v20  ;;  %v421_v3 = vmul.f32 %v930_v1, %v291_v0  ;;  %v422_v4 = vmul.f32 %v930_v1, %v292_v2 }
  0x74   : > { %527 = vst [vmem:[%s946_s21 + $0x340] sm:$0xff] %v399_v21  ;;  %528 = vst [vmem:[%s946_s21 + $0x348] sm:$0xff] %v400_v25 }
  0x75   : > { %529 = vst [vmem:[%s946_s21 + $0x350] sm:$0xff] %v401_v26  ;;  %530 = vst [vmem:[%s946_s21 + $0x358] sm:$0xff] %v402_v27 }
  0x76   : > { %531 = vst [vmem:[%s946_s21 + $0x360] sm:$0xff] %v403_v31  ;;  %532 = vst [vmem:[%s946_s21 + $0x368] sm:$0xff] %v404_v32 }
  0x77   : > { %533 = vst [vmem:[%s946_s21 + $0x370] sm:$0xff] %v405_v33  ;;  %534 = vst [vmem:[%s946_s21 + $0x378] sm:$0xff] %v406_v37 }
  0x78   : > { %535 = vst [vmem:[%s946_s21 + $0x380] sm:$0xff] %v407_v38  ;;  %536 = vst [vmem:[%s946_s21 + $0x388] sm:$0xff] %v408_v39 }
  0x79   : > { %537 = vst [vmem:[%s946_s21 + $0x390] sm:$0xff] %v409_v43  ;;  %538 = vst [vmem:[%s946_s21 + $0x398] sm:$0xff] %v410_v44 }
  0x7a   : > { %539 = vst [vmem:[%s946_s21 + $0x3a0] sm:$0xff] %v411_v45  ;;  %540 = vst [vmem:[%s946_s21 + $0x3a8] sm:$0xff] %v412_v49 }
  0x7b   : > { %541 = vst [vmem:[%s946_s21 + $0x3b0] sm:$0xff] %v413_v50  ;;  %542 = vst [vmem:[%s946_s21 + $0x3b8] sm:$0xff] %v414_v51 }
  0x7c   : > { %543 = vst [vmem:[%s946_s21 + $0x3c0] sm:$0xff] %v415_v55  ;;  %544 = vst [vmem:[%s946_s21 + $0x3c8] sm:$0xff] %v416_v56 }
  0x7d   : > { %545 = vst [vmem:[%s946_s21 + $0x3d0] sm:$0xff] %v417_v57  ;;  %546 = vst [vmem:[%s946_s21 + $0x3d8] sm:$0xff] %v418_v61 }
  0x7e   : > { %547 = vst [vmem:[%s946_s21 + $0x3e0] sm:$0xff] %v419_v62  ;;  %548 = vst [vmem:[%s946_s21 + $0x3e8] sm:$0xff] %v420_v63 }
  0x7f   : > { %549 = vst [vmem:[%s946_s21 + $0x3f0] sm:$0xff] %v421_v3  ;;  %550 = vst [vmem:[%s946_s21 + $0x3f8] sm:$0xff] %v422_v4 }
  0x80   : > { %745 = shalt.err (!%p742_p10)
}
  0x81   : > { %s746_s18 = scalar_lea.hbm %s1312_s7, 16384  ;;  %s750_s25 = scalar_lea.hbm %s1369_s2, 32768 }
  0x82   : > { %p747_p0 = scmp.ne.s32.totalorder %s1312_s7, %s746_s18  ;;  %p751_p1 = scmp.lt.s32.totalorder %s1312_s7, %s1369_s2 }
  0x83   : > { %p752_p3 = scmp.lt.s32.totalorder %s750_s25, %s746_s18 }
  0x84   : > { %p748_p2 = pnand %p747_p0, %p1378_p12 }
  0x85   : > { %p753_p6 = por %p752_p3, %p751_p1 }
  0x86   : > { %p749_p9 = pneg %p748_p2 }
  0x88   : > { %p754_p11 = pnand %p753_p6, %p749_p9 }
  0x8a   : > { %757 = shalt.err (!%p754_p11)
}
  0x8b   : > { %s802_s30 = smov 128   ;;  %s803_s6 = smov 8  }
  0x8c   : > { %656 = dma.vmem_to_hbm [thread:$0]  (%p1378_p12), %s1314_s4, 16384, %s1312_s7, %s552_s8, %s802_s30, %s802_s30, %s803_s6  }
  0x8d PF: > { %s580_s29 = sand.u32 1, %s784_s11   ;;  %p1379_p13 = scmp.ne.s32.totalorder %s1375_s23, 0 }
  0x8e   : > { %p1380_p4 = scmp.ge.s32.totalorder %s796_s14, 2  ;;  %s581_s21 = scalar_lea.sflag [#allocation5], %s580_s29 }
  0x90   : > { %p663_p5 = pnand %p1380_p4, %p1379_p13 }
  0x92   : > { %p664_p7 = pneg %p663_p5 }
  0x94   : > { %779 = dma.done.wait (%p664_p7), %s581_s21, 16384  }
  0x95   : > { %781 = vsyncadd (%p664_p7), %s581_s21, 4294950912  ;;  %p16_p8 = scmp.ge.s32.totalorder %s847_s16, 4   ;;  %s1381_s11 = smov %s788_s12 }
  0x96   : > { %s1382_s12 = smov %s792_s13  ;;  %s1383_s13 = smov %s859_s19 }
  0x97   : > { %s1384_s14 = smov %s847_s16  ;;  %18 = sbr.rel (!%p16_p8) target bundleno = 7 (0x7), region = 73 }
  0x9c   :  { %586 = vsyncpa [#allocation4], 1 }
  0x9d   :  { %588 = vsyncpa [#allocation4 + $0x1], 1 }
  0x9e   :  { %589 = vsyncpa [#allocation5], 1 }
  0x9f   :  { %591 = vsyncpa [#allocation5 + $0x1], 1 }

</bundles_post_ra>
